<compile_context>
chip_gen: v5e
topology: v5e:2x2
jax: 0.10.0
libtpu: 0.0.40
codegen_flags: <defaults>
</compile_context>

<pallas_src>
import functools
import math

import jax
import jax.numpy as jnp
from jax.experimental import pallas as pl
from jax.experimental.pallas import tpu as pltpu


_LANES = 1024  # lane-dense slab width (multiple of 128)


# ----------------------------------------------------------------------------
# Pallas kernel: apply an elementwise expression to one VMEM tile.
# ----------------------------------------------------------------------------
def _expression_kernel(*refs, expr_fn):
    *in_refs, o_ref = refs
    o_ref[...] = expr_fn(*(r[...] for r in in_refs)).astype(o_ref.dtype)


def _sublane_align(itemsize):
    # Native packed sublane tile: f32 -> 8, bf16 -> 16, int8/fp8 -> 32.
    return max(8, 32 // max(1, itemsize))


def _round_up(x, m):
    return ((x + m - 1) // m) * m


def _apply_expression_flat(flats, expr_fn, out_dtype, total):
    """Run an elementwise expression over same-length 1-D inputs.

    Builds a lane-dense (rows, 1024) slab, tiles rows so each block is ~2 MiB,
    runs one pallas_call over a 1-D parallel grid, and returns the first
    `total` elements (padding sliced off).
    """
    itemsizes = [jnp.dtype(f.dtype).itemsize for f in flats]
    itemsizes.append(jnp.dtype(out_dtype).itemsize)
    max_item = max(itemsizes)
    align = max(_sublane_align(i) for i in itemsizes)

    # ~2 MiB per block: in+out, double-buffered => <= ~8 MiB live VMEM,
    # safe under v5e's 16 MiB scoped default and v7x's 32 MiB/64 MiB VMEM.
    target_block_bytes = 2 << 20
    target_tm = max(
        align, (target_block_bytes // (_LANES * max_item)) // align * align
    )

    rows = pl.cdiv(total, _LANES)
    grid_n = max(1, pl.cdiv(rows, target_tm))
    tm = _round_up(pl.cdiv(rows, grid_n), align)
    rows_padded = grid_n * tm
    padded_total = rows_padded * _LANES

    x2ds = []
    for f in flats:
        pad = padded_total - f.shape[0]
        if pad:
            # Pad value 1 is benign for log/division-style expressions; the
            # padded tail is sliced off before returning.
            f = jnp.pad(f, (0, pad), constant_values=1)
        x2ds.append(f.reshape(rows_padded, _LANES))

    kernel = functools.partial(_expression_kernel, expr_fn=expr_fn)
    y2d = pl.pallas_call(
        kernel,
        out_shape=jax.ShapeDtypeStruct((rows_padded, _LANES), out_dtype),
        grid=(grid_n,),
        in_specs=[pl.BlockSpec((tm, _LANES), lambda i: (i, 0)) for _ in x2ds],
        out_specs=pl.BlockSpec((tm, _LANES), lambda i: (i, 0)),
        compiler_params=pltpu.CompilerParams(
            dimension_semantics=("parallel",)
        ),
    )(*x2ds)
    return y2d.reshape(-1)[:total]


# ----------------------------------------------------------------------------
# Expression module (JAX/Pallas version of the PyTorch nn.Module).
# ----------------------------------------------------------------------------
class Expression:
    """Compute given expression on forward pass.

    Large, same-shape array inputs are processed by a single lane-dense Pallas
    kernel; small inputs (or non-elementwise expressions) call
    `expression_fn` directly so XLA can fuse them into surrounding ops.

    Parameters
    ----------
    expression_fn : callable
        Elementwise function on jnp arrays (e.g. square, safe_log, or a fused
        composition such as ``lambda x: safe_log(square(x))``).
    min_pallas_bytes : int
        Dispatch threshold; inputs smaller than this bypass Pallas.
    """

    def __init__(self, expression_fn, min_pallas_bytes=1 << 20):
        self.expression_fn = expression_fn
        self.min_pallas_bytes = min_pallas_bytes

    def __call__(self, *x):
        return self.forward(*x)

    def forward(self, *x):
        if not x:
            return self.expression_fn()
        arrs = [jnp.asarray(a) for a in x]
        shape = arrs[0].shape
        same_shape = all(a.shape == shape for a in arrs)
        total = math.prod(shape)
        nbytes = sum(total * jnp.dtype(a.dtype).itemsize for a in arrs)

        if not same_shape or total == 0 or nbytes < self.min_pallas_bytes:
            # Tiny activations / mismatched shapes: direct call (XLA fuses it).
            return self.expression_fn(*arrs)

        # Abstract-evaluate to learn the output dtype/shape (no compute).
        out_aval = jax.eval_shape(
            self.expression_fn,
            *[jax.ShapeDtypeStruct(a.shape, a.dtype) for a in arrs],
        )
        if (
            not hasattr(out_aval, "shape")
            or not hasattr(out_aval, "dtype")
            or tuple(out_aval.shape) != tuple(shape)
        ):
            # Not a plain same-shape elementwise map -> direct call.
            # TODO(synk): non-elementwise expression_fns (reductions, reshapes)
            # have no generic Pallas fast path here; they run as plain JAX.
            return self.expression_fn(*arrs)

        flats = [a.reshape(-1) for a in arrs]
        y = _apply_expression_flat(flats, self.expression_fn, out_aval.dtype, total)
        return y.reshape(shape)

    def __repr__(self):
        fn = self.expression_fn
        kw = getattr(fn, "keywords", getattr(fn, "kwargs", None))
        if hasattr(fn, "func") and kw is not None:
            expression_str = "{:s} {:s}".format(fn.func.__name__, str(kw))
        elif hasattr(fn, "__name__"):
            expression_str = fn.__name__
        else:
            expression_str = repr(fn)
        return self.__class__.__name__ + "(expression=%s) " % expression_str


# Typical expressions that Expression wraps in FDCN-style EEG ConvNets.
def square(x):
    return x * x


def safe_log(x, eps=1e-6):
    return jnp.log(jnp.maximum(x, eps))


if __name__ == "__main__":
    key = jax.random.PRNGKey(0)
    k1, k2 = jax.random.split(key)

    # 1) Small NCHW activation (what the FDCN conv stack produces). Tiny
    #    tensors bypass Pallas by default; force the kernel path here to
    #    exercise and validate it on TPU.
    x_small = jax.random.normal(k1, (2, 4, 16, 16), dtype=jnp.float32)

    square_forced = Expression(square, min_pallas_bytes=0)     # force Pallas
    safelog_forced = Expression(safe_log, min_pallas_bytes=0)  # force Pallas
    y_sq = jax.block_until_ready(square_forced(x_small))
    y_log = jax.block_until_ready(safelog_forced(y_sq))

    ref_sq = jnp.square(x_small)
    ref_log = jnp.log(jnp.maximum(ref_sq, 1e-6))
    assert y_sq.shape == x_small.shape and y_log.shape == x_small.shape
    assert jnp.allclose(y_sq, ref_sq, atol=1e-6, rtol=1e-6)
    assert jnp.allclose(y_log, ref_log, atol=1e-5, rtol=1e-5)

    # 2) Medium activation (> 1 MiB): dispatches to Pallas automatically with
    #    a multi-step parallel grid, using a FUSED square->safe_log expression
    #    (one HBM round trip instead of two separate kernels).
    x_med = jax.random.normal(k2, (2, 40, 128, 64), dtype=jnp.float32)
    fused = Expression(lambda t: safe_log(square(t)))
    y_fused = jax.block_until_ready(fused(x_med))
    ref_fused = jnp.log(jnp.maximum(jnp.square(x_med), 1e-6))
    assert y_fused.shape == x_med.shape
    assert jnp.allclose(y_fused, ref_fused, atol=1e-5, rtol=1e-5)

    # 3) Default small-tensor bypass (no Pallas launch for KB-scale tensors).
    bypass = Expression(square)
    y_bp = jax.block_until_ready(bypass(x_small))
    assert jnp.allclose(y_bp, ref_sq, atol=1e-6, rtol=1e-6)

    print("KERNEL_OK")
</pallas_src>

<mosaic_0001>
module attributes {stable_mosaic.version = 11 : i64} {
  func.func @_expression_kernel(%arg0: i32, %arg1: memref<8x1024xf32, #tpu.memory_space<vmem>>, %arg2: memref<8x1024xf32, #tpu.memory_space<vmem>>) attributes {dimension_semantics = [#tpu.dimension_semantics<parallel>], iteration_bounds = array<i64: 1>, scalar_prefetch = 0 : i64, scratch_operands = 0 : i64, tpu.core_type = #tpu.core_type<tc>, window_params = [{transform_indices = @transform_0, window_bounds = array<i64: 8, 1024>}, {transform_indices = @transform_1, window_bounds = array<i64: 8, 1024>}]} {
    %c0 = arith.constant 0 : index
    %c0_0 = arith.constant 0 : index
    %0 = vector.load %arg1[%c0, %c0_0] : memref<8x1024xf32, #tpu.memory_space<vmem>>, vector<8x1024xf32>
    %1 = arith.mulf %0, %0 : vector<8x1024xf32>
    %c0_1 = arith.constant 0 : index
    %c0_2 = arith.constant 0 : index
    %2 = vector.load %arg2[%c0_1, %c0_2] : memref<8x1024xf32, #tpu.memory_space<vmem>>, vector<8x1024xf32>
    tpu.vector_store %arg2[%c0_1, %c0_2], %1 {strides = array<i32>} : memref<8x1024xf32, #tpu.memory_space<vmem>>, vector<8x1024xf32>,
    return
  }
  func.func @transform_0(%arg0: i32) -> (i32, i32) {
    %c0_i32 = arith.constant 0 : i32
    %c0_i32_0 = arith.constant 0 : i32
    return %arg0, %c0_i32 : i32, i32
  }
  func.func @transform_1(%arg0: i32) -> (i32, i32) {
    %c0_i32 = arith.constant 0 : i32
    %c0_i32_0 = arith.constant 0 : i32
    return %arg0, %c0_i32 : i32, i32
  }
}

</mosaic_0001>

<bundles_post_ra>
// kernel: tpu_custom_call.1
= control target key start
LH: loop header
LB: loop body
LE: loop exit
PB: predicated region body
PF: predicated region fallthrough
CT: control target
= control target key end

     0   :  { %6 = vsyncpa [#allocation3], 0  ;;  %s136_s0 = inlined_call_operand.hbm [shape: f32[8,1024], index: 0, kind: input, shape index: {}]   ;;  %s137_s1 = inlined_call_operand.hbm [shape: f32[8,1024], index: 1, kind: output, shape index: {}]  }
   0x1   :  { %7 = vsyncpa [#allocation4], 0  ;;  %s13_s8 = sshll.u32 %s136_s0, 4  ;;  %s118_s9 = smov [#allocation2]   ;;  %s14_s8 = int_to_ptr.hbm [resolvable:$true] %s13_s8 }
   0x2   :  { %s15_s10 = sshll.u32 %s118_s9, 4  ;;  %s16_s10 = int_to_ptr.vmem [resolvable:$true] %s15_s10 }
   0x3   :  { %18 = dma.hbm_to_vmem [thread:$0]  %s14_s8, 1024, %s16_s10, [#allocation3]  }
   0x4   :  { %114 = dma.done.wait [#allocation3], 1024  }
   0x5   :  { %115 = vsyncadd [#allocation3], 4294966272  ;;  %v23_v0 = vld [vmem:[#allocation2] sm:$0xff]  ;;  %v24_v1 = vld [vmem:[#allocation2 + $0x8] sm:$0xff]  ;;  %s119_s0 = smov [#allocation5]   ;;  %s54_s14 = sshll.u32 %s137_s1, 4  ;;  %s55_s14 = int_to_ptr.hbm [resolvable:$true] %s54_s14 }
   0x6   :  { %v25_v2 = vld [vmem:[#allocation2 + $0x10] sm:$0xff]  ;;  %v31_v3 = vmul.f32 %v23_v0, %v23_v0  ;;  %v32_v4 = vmul.f32 %v24_v1, %v24_v1  ;;  %v26_v6 = vld [vmem:[#allocation2 + $0x18] sm:$0xff]  ;;  %v27_v7 = vld [vmem:[#allocation2 + $0x20] sm:$0xff]  ;;  %s52_s11 = sshll.u32 %s119_s0, 4  ;;  %s53_s11 = int_to_ptr.vmem [resolvable:$true] %s52_s11 }
   0x7   :  { %v33_v5 = vmul.f32 %v25_v2, %v25_v2  ;;  %v28_v8 = vld [vmem:[#allocation2 + $0x28] sm:$0xff]  ;;  %v34_v9 = vmul.f32 %v26_v6, %v26_v6  ;;  %v29_v10 = vld [vmem:[#allocation2 + $0x30] sm:$0xff]  ;;  %v35_v11 = vmul.f32 %v27_v7, %v27_v7  ;;  %v30_v12 = vld [vmem:[#allocation2 + $0x38] sm:$0xff] }
   0x8   :  { %39 = vst [vmem:[#allocation5] sm:$0xff] %v31_v3  ;;  %v36_v13 = vmul.f32 %v28_v8, %v28_v8  ;;  %v37_v14 = vmul.f32 %v29_v10, %v29_v10  ;;  %v38_v15 = vmul.f32 %v30_v12, %v30_v12 }
   0x9   :  { %40 = vst [vmem:[#allocation5 + $0x8] sm:$0xff] %v32_v4 }
   0xa   :  { %41 = vst [vmem:[#allocation5 + $0x10] sm:$0xff] %v33_v5 }
   0xb   :  { %42 = vst [vmem:[#allocation5 + $0x18] sm:$0xff] %v34_v9 }
   0xc   :  { %43 = vst [vmem:[#allocation5 + $0x20] sm:$0xff] %v35_v11 }
   0xd   :  { %44 = vst [vmem:[#allocation5 + $0x28] sm:$0xff] %v36_v13 }
   0xe   :  { %45 = vst [vmem:[#allocation5 + $0x30] sm:$0xff] %v37_v14 }
   0xf   :  { %46 = vst [vmem:[#allocation5 + $0x38] sm:$0xff] %v38_v15 }
  0x10   :  { %57 = dma.vmem_to_hbm [thread:$0]  %s53_s11, 1024, %s55_s14, [#allocation4]  }
  0x11   :  { %116 = dma.done.wait [#allocation4], 1024  }
  0x12   :  { %117 = vsyncadd [#allocation4], 4294966272 }
  0x13   :  { %62 = vsyncpa [#allocation3], 1 }
  0x14   :  { %63 = vsyncpa [#allocation4], 1 }

</bundles_post_ra>
